<compile_context>
chip_gen: v5e
topology: v5e:2x2
jax: 0.10.0
libtpu: 0.0.40
codegen_flags: <defaults>
</compile_context>

<pallas_src>
import functools

import jax
import jax.numpy as jnp
from jax.experimental import pallas as pl
from jax.experimental.pallas import tpu as pltpu

N_FEATURES = 100          # `n` in the PyTorch module
N_POP = 3                 # len(POPS)
OUT_COLS = 8              # lane-padded logits width (3 -> 8, zero padded)


def _round_up(v, m):
    return ((v + m - 1) // m) * m


def _cdiv(a, b):
    return -(-a // b)


def _ancestry_kernel(x_ref, w1_ref, b1_ref, w2_ref, b2_ref, w3_ref, b3_ref,
                     o_ref):
    """One batch tile of the fused 3-layer MLP forward pass (all f32)."""
    x = x_ref[...]                                            # (TILE_B, 100)

    # fc1 + sigmoid
    h1 = jnp.dot(x, w1_ref[...], preferred_element_type=jnp.float32)
    h1 = jax.nn.sigmoid(h1 + b1_ref[...])                     # (TILE_B, H)

    # fc2 + sigmoid
    h2 = jnp.dot(h1, w2_ref[...], preferred_element_type=jnp.float32)
    h2 = jax.nn.sigmoid(h2 + b2_ref[...])                     # (TILE_B, H)

    # fc3 (logits; softmax belongs to `inference`, not `forward`)
    logits = jnp.dot(h2, w3_ref[...], preferred_element_type=jnp.float32)
    o_ref[...] = (logits + b3_ref[...]).astype(o_ref.dtype)   # (TILE_B, 8)


def _choose_batch_tiling(B, max_tile_b):
    """Pick (tile_b, b_pad) — 16-aligned tile, >=2 grid steps when B > 16."""
    b16 = _round_up(B, 16)
    if b16 <= 16:
        return 16, 16
    steps = max(2, _cdiv(b16, max_tile_b))         # >=2 steps for v7x megacore
    tile_b = _round_up(_cdiv(b16, steps), 16)
    n_steps = _cdiv(b16, tile_b)
    return tile_b, tile_b * n_steps


@functools.partial(jax.jit, static_argnames=("max_tile_b",))
def ancestry_net_forward(x, params, *, max_tile_b=4096):
    """Pallas forward pass. x: (B, 100) float32 -> (B, 3) float32 logits."""
    w1, b1, w2, b2, w3, b3 = params
    B, F = x.shape
    assert F == N_FEATURES
    H = w1.shape[1]

    tile_b, b_pad = _choose_batch_tiling(B, max_tile_b)
    grid = (b_pad // tile_b,)

    # Only the batch dim is padded (so the partial last tile computes on zeros,
    # never stale VMEM); x itself is streamed as-is -- no feature pad / cast.
    x_p = x if b_pad == B else jnp.pad(x, ((0, b_pad - B), (0, 0)))
    # Lane-pad only the tiny fc3 operands (3 -> 8 output columns).
    w3_p = jnp.pad(w3, ((0, 0), (0, OUT_COLS - N_POP)))
    b3_p = jnp.pad(b3, ((0, 0), (0, OUT_COLS - N_POP)))

    const2 = lambda i: (0, 0)  # weights/biases: same block every grid step

    out = pl.pallas_call(
        _ancestry_kernel,
        out_shape=jax.ShapeDtypeStruct((b_pad, OUT_COLS), jnp.float32),
        grid=grid,
        in_specs=[
            pl.BlockSpec((tile_b, F), lambda i: (i, 0)),   # x tile (streamed)
            pl.BlockSpec((F, H), const2),                  # w1 (VMEM-resident)
            pl.BlockSpec((1, H), const2),                  # b1
            pl.BlockSpec((H, H), const2),                  # w2
            pl.BlockSpec((1, H), const2),                  # b2
            pl.BlockSpec((H, OUT_COLS), const2),           # w3 (padded to 8)
            pl.BlockSpec((1, OUT_COLS), const2),           # b3 (padded to 8)
        ],
        out_specs=pl.BlockSpec((tile_b, OUT_COLS), lambda i: (i, 0)),
        compiler_params=pltpu.CompilerParams(
            dimension_semantics=("parallel",),
            vmem_limit_bytes=32 * 1024 * 1024,
        ),
    )(x_p, w1, b1, w2, b2, w3_p, b3_p)

    return out[:B, :N_POP]


def init_params(key, n_hidden):
    """Deterministic init mimicking torch.nn.Linear (uniform +-1/sqrt(fan_in)).

    Weights are stored transposed as (in, out); biases as (1, out).
    """
    def linear(k, fan_in, fan_out):
        kw, kb = jax.random.split(k)
        bound = 1.0 / jnp.sqrt(jnp.float32(fan_in))
        w = jax.random.uniform(kw, (fan_in, fan_out), jnp.float32,
                               minval=-bound, maxval=bound)
        b = jax.random.uniform(kb, (1, fan_out), jnp.float32,
                               minval=-bound, maxval=bound)
        return w, b

    k1, k2, k3 = jax.random.split(key, 3)
    w1, b1 = linear(k1, N_FEATURES, n_hidden)
    w2, b2 = linear(k2, n_hidden, n_hidden)
    w3, b3 = linear(k3, n_hidden, N_POP)
    return (w1, b1, w2, b2, w3, b3)


def _reference_forward(x, params):
    """Pure-JAX f32 reference matching the PyTorch forward()."""
    w1, b1, w2, b2, w3, b3 = params
    h1 = jax.nn.sigmoid(jnp.dot(x, w1, preferred_element_type=jnp.float32) + b1)
    h2 = jax.nn.sigmoid(jnp.dot(h1, w2, preferred_element_type=jnp.float32) + b2)
    return jnp.dot(h2, w3, preferred_element_type=jnp.float32) + b3


if __name__ == "__main__":
    key = jax.random.PRNGKey(0)
    k_params, k_x1, k_x2 = jax.random.split(key, 3)

    n_hidden = 32   # n_hidden_neurons
    params = init_params(k_params, n_hidden)

    # --- small batch (single grid step, padded partial tile) ---------------
    x_small = jax.random.normal(k_x1, (2, N_FEATURES), jnp.float32)
    logits_small = jax.block_until_ready(ancestry_net_forward(x_small, params))
    ref_small = _reference_forward(x_small, params)
    assert logits_small.shape == (2, N_POP)
    assert jnp.allclose(logits_small, ref_small, atol=1e-5, rtol=1e-5)

    # --- larger batch (multi-step parallel grid + batch-pad remainder) -----
    x_big = jax.random.normal(k_x2, (100, N_FEATURES), jnp.float32)
    logits_big = jax.block_until_ready(ancestry_net_forward(x_big, params))
    ref_big = _reference_forward(x_big, params)
    assert logits_big.shape == (100, N_POP)
    assert jnp.allclose(logits_big, ref_big, atol=1e-5, rtol=1e-5)

    print("KERNEL_OK")
</pallas_src>

<mosaic_0001>
module attributes {stable_mosaic.version = 11 : i64} {
  func.func @_ancestry_kernel(%arg0: i32, %arg1: memref<16x100xf32, #tpu.memory_space<vmem>>, %arg2: memref<100x32xf32, #tpu.memory_space<vmem>>, %arg3: memref<1x32xf32, #tpu.memory_space<vmem>>, %arg4: memref<32x32xf32, #tpu.memory_space<vmem>>, %arg5: memref<1x32xf32, #tpu.memory_space<vmem>>, %arg6: memref<32x8xf32, #tpu.memory_space<vmem>>, %arg7: memref<1x8xf32, #tpu.memory_space<vmem>>, %arg8: memref<16x8xf32, #tpu.memory_space<vmem>>) attributes {dimension_semantics = [#tpu.dimension_semantics<parallel>], iteration_bounds = array<i64: 1>, scalar_prefetch = 0 : i64, scratch_operands = 0 : i64, tpu.core_type = #tpu.core_type<tc>, window_params = [{transform_indices = @transform_0, window_bounds = array<i64: 16, 100>}, {pipeline_mode = #tpu.pipeline_mode<synchronous>, transform_indices = @transform_1, window_bounds = array<i64: 100, 32>}, {pipeline_mode = #tpu.pipeline_mode<synchronous>, transform_indices = @transform_2, window_bounds = array<i64: 1, 32>}, {pipeline_mode = #tpu.pipeline_mode<synchronous>, transform_indices = @transform_3, window_bounds = array<i64: 32, 32>}, {pipeline_mode = #tpu.pipeline_mode<synchronous>, transform_indices = @transform_4, window_bounds = array<i64: 1, 32>}, {pipeline_mode = #tpu.pipeline_mode<synchronous>, transform_indices = @transform_5, window_bounds = array<i64: 32, 8>}, {pipeline_mode = #tpu.pipeline_mode<synchronous>, transform_indices = @transform_6, window_bounds = array<i64: 1, 8>}, {transform_indices = @transform_7, window_bounds = array<i64: 16, 8>}]} {
    %c0 = arith.constant 0 : index
    %c0_0 = arith.constant 0 : index
    %0 = vector.load %arg1[%c0, %c0_0] : memref<16x100xf32, #tpu.memory_space<vmem>>, vector<16x100xf32>
    %c0_1 = arith.constant 0 : index
    %c0_2 = arith.constant 0 : index
    %1 = vector.load %arg2[%c0_1, %c0_2] : memref<100x32xf32, #tpu.memory_space<vmem>>, vector<100x32xf32>
    %cst = arith.constant dense<0.000000e+00> : vector<16x32xf32>
    %2 = tpu.matmul %0, %1, %cst {dimension_numbers = #tpu.dot_dimension_numbers<[1], [0], [0], [1], [0, 0, 1, 1], [], []>} : vector<16x100xf32>, vector<100x32xf32>, vector<16x32xf32> -> vector<16x32xf32>
    %c0_3 = arith.constant 0 : index
    %c0_4 = arith.constant 0 : index
    %3 = vector.load %arg3[%c0_3, %c0_4] : memref<1x32xf32, #tpu.memory_space<vmem>>, vector<1x32xf32>
    %4 = vector.broadcast %3 : vector<1x32xf32> to vector<16x32xf32>
    %5 = arith.addf %2, %4 : vector<16x32xf32>
    %6 = arith.negf %5 : vector<16x32xf32>
    %7 = math.exp %6 : vector<16x32xf32>
    %cst_5 = arith.constant 1.000000e+00 : f32
    %8 = vector.broadcast %cst_5 : f32 to vector<16x32xf32>
    %9 = arith.addf %8, %7 : vector<16x32xf32>
    %10 = arith.divf %8, %9 : vector<16x32xf32>
    %c0_6 = arith.constant 0 : index
    %c0_7 = arith.constant 0 : index
    %11 = vector.load %arg4[%c0_6, %c0_7] : memref<32x32xf32, #tpu.memory_space<vmem>>, vector<32x32xf32>
    %cst_8 = arith.constant dense<0.000000e+00> : vector<16x32xf32>
    %12 = tpu.matmul %10, %11, %cst_8 {dimension_numbers = #tpu.dot_dimension_numbers<[1], [0], [0], [1], [0, 0, 1, 1], [], []>} : vector<16x32xf32>, vector<32x32xf32>, vector<16x32xf32> -> vector<16x32xf32>
    %c0_9 = arith.constant 0 : index
    %c0_10 = arith.constant 0 : index
    %13 = vector.load %arg5[%c0_9, %c0_10] : memref<1x32xf32, #tpu.memory_space<vmem>>, vector<1x32xf32>
    %14 = vector.broadcast %13 : vector<1x32xf32> to vector<16x32xf32>
    %15 = arith.addf %12, %14 : vector<16x32xf32>
    %16 = arith.negf %15 : vector<16x32xf32>
    %17 = math.exp %16 : vector<16x32xf32>
    %cst_11 = arith.constant 1.000000e+00 : f32
    %18 = vector.broadcast %cst_11 : f32 to vector<16x32xf32>
    %19 = arith.addf %18, %17 : vector<16x32xf32>
    %20 = arith.divf %18, %19 : vector<16x32xf32>
    %c0_12 = arith.constant 0 : index
    %c0_13 = arith.constant 0 : index
    %21 = vector.load %arg6[%c0_12, %c0_13] : memref<32x8xf32, #tpu.memory_space<vmem>>, vector<32x8xf32>
    %cst_14 = arith.constant dense<0.000000e+00> : vector<16x8xf32>
    %22 = tpu.matmul %20, %21, %cst_14 {dimension_numbers = #tpu.dot_dimension_numbers<[1], [0], [0], [1], [0, 0, 1, 1], [], []>} : vector<16x32xf32>, vector<32x8xf32>, vector<16x8xf32> -> vector<16x8xf32>
    %c0_15 = arith.constant 0 : index
    %c0_16 = arith.constant 0 : index
    %23 = vector.load %arg7[%c0_15, %c0_16] : memref<1x8xf32, #tpu.memory_space<vmem>>, vector<1x8xf32>
    %24 = vector.broadcast %23 : vector<1x8xf32> to vector<16x8xf32>
    %25 = arith.addf %22, %24 : vector<16x8xf32>
    %c0_17 = arith.constant 0 : index
    %c0_18 = arith.constant 0 : index
    %26 = vector.load %arg8[%c0_17, %c0_18] : memref<16x8xf32, #tpu.memory_space<vmem>>, vector<16x8xf32>
    tpu.vector_store %arg8[%c0_17, %c0_18], %25 {strides = array<i32>} : memref<16x8xf32, #tpu.memory_space<vmem>>, vector<16x8xf32>,
    return
  }
  func.func @transform_0(%arg0: i32) -> (i32, i32) {
    %c0_i32 = arith.constant 0 : i32
    %c0_i32_0 = arith.constant 0 : i32
    return %arg0, %c0_i32 : i32, i32
  }
  func.func @transform_1(%arg0: i32) -> (i32, i32) {
    %c0_i32 = arith.constant 0 : i32
    %c0_i32_0 = arith.constant 0 : i32
    %c0_i32_1 = arith.constant 0 : i32
    return %c0_i32, %c0_i32_0 : i32, i32
  }
  func.func @transform_2(%arg0: i32) -> (i32, i32) {
    %c0_i32 = arith.constant 0 : i32
    %c0_i32_0 = arith.constant 0 : i32
    %c0_i32_1 = arith.constant 0 : i32
    return %c0_i32, %c0_i32_0 : i32, i32
  }
  func.func @transform_3(%arg0: i32) -> (i32, i32) {
    %c0_i32 = arith.constant 0 : i32
    %c0_i32_0 = arith.constant 0 : i32
    %c0_i32_1 = arith.constant 0 : i32
    return %c0_i32, %c0_i32_0 : i32, i32
  }
  func.func @transform_4(%arg0: i32) -> (i32, i32) {
    %c0_i32 = arith.constant 0 : i32
    %c0_i32_0 = arith.constant 0 : i32
    %c0_i32_1 = arith.constant 0 : i32
    return %c0_i32, %c0_i32_0 : i32, i32
  }
  func.func @transform_5(%arg0: i32) -> (i32, i32) {
    %c0_i32 = arith.constant 0 : i32
    %c0_i32_0 = arith.constant 0 : i32
    %c0_i32_1 = arith.constant 0 : i32
    return %c0_i32, %c0_i32_0 : i32, i32
  }
  func.func @transform_6(%arg0: i32) -> (i32, i32) {
    %c0_i32 = arith.constant 0 : i32
    %c0_i32_0 = arith.constant 0 : i32
    %c0_i32_1 = arith.constant 0 : i32
    return %c0_i32, %c0_i32_0 : i32, i32
  }
  func.func @transform_7(%arg0: i32) -> (i32, i32) {
    %c0_i32 = arith.constant 0 : i32
    %c0_i32_0 = arith.constant 0 : i32
    return %arg0, %c0_i32 : i32, i32
  }
}

</mosaic_0001>

<bundles_post_ra>
// kernel: ancestry_net_forward.1
= control target key start
LH: loop header
LB: loop body
LE: loop exit
PB: predicated region body
PF: predicated region fallthrough
CT: control target
= control target key end

     0   :  { %vm52_vm0 = vcmask 1043456   ;;  %vm45_vm1 = vcmask 818176   ;;  %vm125_vm5 = vcmask 261120   ;;  %s408_s1 = inlined_call_operand.vmem [shape: f32[100,32], index: 1, kind: input, shape index: {}]   ;;  %s409_s2 = inlined_call_operand.vmem [shape: f32[1,32], index: 2, kind: input, shape index: {}]   ;;  %s410_s0 = inlined_call_operand.vmem [shape: f32[16,100], index: 0, kind: input, shape index: {}]   ;;  %s411_s4 = inlined_call_operand.vmem [shape: f32[1,32], index: 4, kind: input, shape index: {}]   ;;  %s412_s3 = inlined_call_operand.vmem [shape: f32[32,32], index: 3, kind: input, shape index: {}]   ;;  %s413_s6 = inlined_call_operand.vmem [shape: f32[1,8], index: 6, kind: input, shape index: {}]   ;;  %s414_s5 = inlined_call_operand.vmem [shape: f32[32,8], index: 5, kind: input, shape index: {}]   ;;  %s415_s7 = inlined_call_operand.vmem [shape: f32[16,8], index: 7, kind: output, shape index: {}]  }
   0x1   :  { %v40_v0 = vld [vmem:[%s408_s1 + $0x60] sm:$0xf]  ;;  %v39_v1 = vld [vmem:[%s408_s1 + $0x58] sm:$0xff]  ;;  %v38_v2 = vld [vmem:[%s408_s1 + $0x50] sm:$0xff] }
   0x2   :  { %237 = vmatpush.msk.msra.mxu0 %vm52_vm0, %v40_v0  ;;  %248 = vmatpush.msk.msra.mxu3 %vm52_vm0, %v40_v0  ;;  %v37_v3 = vld [vmem:[%s408_s1 + $0x48] sm:$0xff]  ;;  %v36_v4 = vld [vmem:[%s408_s1 + $0x40] sm:$0xff]  ;;  %v35_v5 = vld [vmem:[%s408_s1 + $0x38] sm:$0xff] }
   0x3   :  { %v34_v6 = vld [vmem:[%s408_s1 + $0x30] sm:$0xff]  ;;  %v33_v7 = vld [vmem:[%s408_s1 + $0x28] sm:$0xff]  ;;  %v32_v8 = vld [vmem:[%s408_s1 + $0x20] sm:$0xff] }
   0x4   :  { %60 = vmatpush.msra.mxu0 %v39_v1  ;;  %249 = vmatpush.msra.mxu3 %v39_v1  ;;  %v31_v9 = vld [vmem:[%s408_s1 + $0x18] sm:$0xff]  ;;  %v30_v10 = vld [vmem:[%s408_s1 + $0x10] sm:$0xff]  ;;  %v29_v11 = vld [vmem:[%s408_s1 + $0x8] sm:$0xff] }
   0x5   :  { %v28_v12 = vld [vmem:[%s408_s1] sm:$0xff]  ;;  %v27_v14 = vld [vmem:[%s410_s0 + $0x8] sm:$0xff]  ;;  %v120_v15 = vld [vmem:[%s412_s3 + $0x18] sm:$0xff] }
   0x6   :  { %61 = vmatpush.msra.mxu0 %v38_v2  ;;  %250 = vmatpush.msra.mxu3 %v38_v2  ;;  %v26_v13 = vld [vmem:[%s410_s0] sm:$0xff]  ;;  %v119_v16 = vld [vmem:[%s412_s3 + $0x10] sm:$0xff]  ;;  %v118_v17 = vld [vmem:[%s412_s3 + $0x8] sm:$0xff] }
   0x7   :  { %144 = vmatpush.msra.mxu1 %v120_v15  ;;  %v117_v18 = vld [vmem:[%s412_s3] sm:$0xff]  ;;  %v196_v50 = vld [vmem:[%s414_s5 + $0x18] sm:$0xff]  ;;  %v195_v51 = vld [vmem:[%s414_s5 + $0x10] sm:$0xff] }
   0x8   :  { %62 = vmatpush.msra.mxu0 %v37_v3  ;;  %251 = vmatpush.msra.mxu3 %v37_v3  ;;  %v261_v19 = vld [vmem:[%s409_s2] ss:$0 sm:$0xff]  ;;  %v194_v52 = vld [vmem:[%s414_s5 + $0x8] sm:$0xff] }
   0x9   :  { %145 = vmatpush.msra.mxu1 %v119_v16  ;;  %219 = vmatpush.msra.mxu2 %v196_v50  ;;  %v193_v53 = vld [vmem:[%s414_s5] sm:$0xff] }
   0xa   :  { %63 = vmatpush.msra.mxu0 %v36_v4  ;;  %252 = vmatpush.msra.mxu3 %v36_v4  ;;  %v262_v54 = vld [vmem:[%s411_s4] ss:$0 sm:$0xff] }
   0xb   :  { %146 = vmatpush.msra.mxu1 %v118_v17  ;;  %220 = vmatpush.msra.mxu2 %v195_v51 }
   0xc   :  { %64 = vmatpush.msra.mxu0 %v35_v5  ;;  %253 = vmatpush.msra.mxu3 %v35_v5 }
   0xd   :  { %147 = vmatpush.msra.mxu1 %v117_v18  ;;  %221 = vmatpush.msra.mxu2 %v194_v52 }
   0xe   :  { %65 = vmatpush.msra.mxu0 %v34_v6  ;;  %254 = vmatpush.msra.mxu3 %v34_v6 }
   0xf   :  { %222 = vmatpush.msra.mxu2 %v193_v53 }
  0x10   :  { %66 = vmatpush.msra.mxu0 %v33_v7  ;;  %255 = vmatpush.msra.mxu3 %v33_v7 }
  0x12   :  { %67 = vmatpush.msra.mxu0 %v32_v8  ;;  %256 = vmatpush.msra.mxu3 %v32_v8 }
  0x14   :  { %68 = vmatpush.msra.mxu0 %v31_v9  ;;  %257 = vmatpush.msra.mxu3 %v31_v9 }
  0x16   :  { %69 = vmatpush.msra.mxu0 %v30_v10  ;;  %258 = vmatpush.msra.mxu3 %v30_v10 }
  0x18   :  { %70 = vmatpush.msra.mxu0 %v29_v11  ;;  %259 = vmatpush.msra.mxu3 %v29_v11 }
  0x1a   :  { %71 = vmatpush.msra.mxu0 %v28_v12  ;;  %260 = vmatpush.msra.mxu3 %v28_v12 }
  0x1b   :  { %238 = vmatmul.msk.f32.vlgmr.msra.gmra.mxu0 %vm45_vm1, %v26_v13  ;;  %239 = vmatmul.msk.f32.vlgmr.msra.gmra.mxu3 %vm45_vm1, %v27_v14 }
  0x98   :  { %v73_v20 = vpop.f32.mrf.mxu0 }
  0x99   :  { %v74_v21 = vadd.f32 %v261_v19, %v73_v20 }
  0x9b   :  { %v240_v22 = vmul.f32 -1.442695, %v74_v21  ;;  %v263_v21 = vld [vmem:[%s413_s6] ss:$0 sm:$0xff] }
  0x9d   :  { %264 = vpow2.f32 %v240_v22 }
  0x9e   :  { %v76_v23 = vpop.f32.mrf.mxu3 }
  0x9f   :  { %v77_v24 = vadd.f32 %v261_v19, %v76_v23 }
  0xa1   :  { %v241_v25 = vmul.f32 -1.442695, %v77_v24 }
  0xa3   :  { %v265_v26 = vpop.eup %264  ;;  %266 = vpow2.f32 %v241_v25 }
  0xa4   :  { %v85_v27 = vadd.f32 1.0, %v265_v26 }
  0xa6   :  { %268 = vrcp.f32 %v85_v27  ;;  %v98_v33 = vand.u32 2147483648, %v85_v27  ;;  %v96_v35 = vand.u32 2147483647, %v85_v27  ;;  %vm92_vm3 = vweird.f32 %v85_v27 }
  0xa8   :  { %v99_v39 = vor.u32 1.1754944e-38, %v98_v33  ;;  %vm97_vm6 = vcmp.eq.f32.partialorder %v96_v35, 8.507059e+37 }
  0xa9   :  { %v267_v28 = vpop.eup %266 }
  0xaa   :  { %v86_v29 = vadd.f32 1.0, %v267_v28 }
  0xac   :  { %v269_v30 = vpop.eup %268  ;;  %270 = vrcp.f32 %v86_v29  ;;  %v113_v44 = vand.u32 2147483648, %v86_v29  ;;  %vm107_vm8 = vweird.f32 %v86_v29  ;;  %v111_v46 = vand.u32 2147483647, %v86_v29 }
  0xad   :  { %v88_v31 = vmul.f32 %v269_v30, %v85_v27  ;;  %vm93_vm2 = vweird.f32 %v269_v30 }
  0xae   :  { %vm94_vm4 = vmor %vm92_vm3, %vm93_vm2  ;;  %v114_v48 = vor.u32 1.1754944e-38, %v113_v44  ;;  %vm112_vm10 = vcmp.eq.f32.partialorder %v111_v46, 8.507059e+37  ;;  %vm230_vm3 = vcmask 64512  }
  0xaf   :  { %v89_v32 = vsub.f32 1.0, %v88_v31 }
  0xb1   :  { %v90_v34 = vmul.f32 %v269_v30, %v89_v32 }
  0xb2   :  { %v271_v36 = vpop.eup %270 }
  0xb3   :  { %v91_v37 = vadd.f32 %v269_v30, %v90_v34  ;;  %v103_v38 = vmul.f32 %v271_v36, %v86_v29  ;;  %vm108_vm7 = vweird.f32 %v271_v36 }
  0xb4   :  { %vm109_vm9 = vmor %vm107_vm8, %vm108_vm7 }
  0xb5   :  { %v95_v40 = vsel %vm94_vm4, %v269_v30, %v91_v37  ;;  %v104_v41 = vsub.f32 1.0, %v103_v38 }
  0xb6   :  { %v100_v42 = vsel %vm97_vm6, %v99_v39, %v95_v40 }
  0xb7   :  { %242 = vmatmul.msk.f32.vlgmr.msra.gmra.mxu1 %vm125_vm5, %v100_v42  ;;  %v105_v43 = vmul.f32 %v271_v36, %v104_v41 }
  0xb9   :  { %v106_v45 = vadd.f32 %v271_v36, %v105_v43 }
  0xbb   :  { %v110_v47 = vsel %vm109_vm9, %v271_v36, %v106_v45 }
  0xbc   :  { %v115_v49 = vsel %vm112_vm10, %v114_v48, %v110_v47 }
  0xbf   :  { %243 = vmatmul.msk.f32.gmra.mxu1 %vm125_vm5, %v115_v49 }
 0x134   :  { %v149_v55 = vpop.f32.mrf.mxu1 }
 0x135   :  { %v150_v56 = vadd.f32 %v262_v54, %v149_v55 }
 0x137   :  { %v244_v57 = vmul.f32 -1.442695, %v150_v56 }
 0x139   :  { %272 = vpow2.f32 %v244_v57 }
 0x13c   :  { %v152_v58 = vpop.f32.mrf.mxu1 }
 0x13d   :  { %v153_v59 = vadd.f32 %v262_v54, %v152_v58 }
 0x13f   :  { %v273_v60 = vpop.eup %272  ;;  %v245_v61 = vmul.f32 -1.442695, %v153_v59 }
 0x140   :  { %v161_v62 = vadd.f32 1.0, %v273_v60 }
 0x141   :  { %274 = vpow2.f32 %v245_v61 }
 0x142   :  { %276 = vrcp.f32 %v161_v62  ;;  %v174_v4 = vand.u32 2147483648, %v161_v62  ;;  %v172_v6 = vand.u32 2147483647, %v161_v62  ;;  %vm168_vm12 = vweird.f32 %v161_v62 }
 0x144   :  { %v175_v9 = vor.u32 1.1754944e-38, %v174_v4  ;;  %vm173_vm14 = vcmp.eq.f32.partialorder %v172_v6, 8.507059e+37 }
 0x147   :  { %v275_v63 = vpop.eup %274 }
 0x148   :  { %v277_v0 = vpop.eup %276  ;;  %v162_v1 = vadd.f32 1.0, %v275_v63 }
 0x149   :  { %v164_v2 = vmul.f32 %v277_v0, %v161_v62  ;;  %vm169_vm11 = vweird.f32 %v277_v0 }
 0x14a   :  { %278 = vrcp.f32 %v162_v1  ;;  %vm170_vm13 = vmor %vm168_vm12, %vm169_vm11  ;;  %v189_v14 = vand.u32 2147483648, %v162_v1  ;;  %v187_v16 = vand.u32 2147483647, %v162_v1  ;;  %vm183_vm0 = vweird.f32 %v162_v1 }
 0x14b   :  { %v165_v3 = vsub.f32 1.0, %v164_v2 }
 0x14c   :  { %v190_v18 = vor.u32 1.1754944e-38, %v189_v14  ;;  %vm188_vm2 = vcmp.eq.f32.partialorder %v187_v16, 8.507059e+37 }
 0x14d   :  { %v166_v5 = vmul.f32 %v277_v0, %v165_v3 }
 0x14f   :  { %v167_v7 = vadd.f32 %v277_v0, %v166_v5 }
 0x150   :  { %v279_v8 = vpop.eup %278 }
 0x151   :  { %v171_v10 = vsel %vm170_vm13, %v277_v0, %v167_v7  ;;  %v179_v11 = vmul.f32 %v279_v8, %v162_v1  ;;  %vm184_vm15 = vweird.f32 %v279_v8 }
 0x152   :  { %v176_v12 = vsel %vm173_vm14, %v175_v9, %v171_v10  ;;  %vm185_vm1 = vmor %vm183_vm0, %vm184_vm15 }
 0x153   :  { %246 = vmatmul.msk.f32.vlgmr.msra.gmra.mxu2 %vm125_vm5, %v176_v12  ;;  %v180_v13 = vsub.f32 1.0, %v179_v11 }
 0x155   :  { %v181_v15 = vmul.f32 %v279_v8, %v180_v13 }
 0x157   :  { %v182_v17 = vadd.f32 %v279_v8, %v181_v15 }
 0x159   :  { %v186_v19 = vsel %vm185_vm1, %v279_v8, %v182_v17 }
 0x15a   :  { %v191_v20 = vsel %vm188_vm2, %v190_v18, %v186_v19 }
 0x15b   :  { %247 = vmatmul.msk.f32.gmra.mxu2 %vm125_vm5, %v191_v20 }
 0x1d6   :  { %v224_v22 = vpop.f32.mrf.mxu2 }
 0x1d7   :  { %v225_v23 = vadd.f32 %v263_v21, %v224_v22 }
 0x1d9   :  { %231 = vst.msk [vmem:[%s415_s7] sm:$0xff] %vm230_vm3, %v225_v23 }
 0x1de   :  { %v227_v24 = vpop.f32.mrf.mxu2 }
 0x1df   :  { %v228_v25 = vadd.f32 %v263_v21, %v227_v24 }
 0x1e1   :  { %232 = vst.msk [vmem:[%s415_s7 + $0x8] sm:$0xff] %vm230_vm3, %v228_v25 }

</bundles_post_ra>
